<compile_context>
chip_gen: v5e
topology: v5e:2x2
jax: 0.10.0
libtpu: 0.0.40
codegen_flags: <defaults>
</compile_context>

<pallas_src>
import functools

import jax
import jax.numpy as jnp
from jax.experimental import pallas as pl
from jax.experimental.pallas import tpu as pltpu

LANE = 128
SUBLANE = 8
HID1 = 128
HID2 = 256


def _round_up(x, m):
    return ((x + m - 1) // m) * m


def _cdiv(a, b):
    return -(-a // b)


def _decoder_kernel(output_dim,
                    z_ref, c_ref,
                    w1a_ref, w1b_ref, b1_ref,
                    w2_ref, b2_ref,
                    w3_ref, b3_ref,
                    o_ref):
    # ---- Layer 1: relu(z @ W1a + cond @ W1b + b1), f32, tiny contraction ----
    h1 = jnp.dot(z_ref[...], w1a_ref[...], preferred_element_type=jnp.float32)
    h1 = h1 + jnp.dot(c_ref[...], w1b_ref[...],
                      preferred_element_type=jnp.float32)
    h1 = jnp.maximum(h1 + b1_ref[...], 0.0)

    # ---- Layer 2: (tb,128) @ (128,256) bf16 -> f32 acc, relu ----------------
    h2 = jnp.dot(h1.astype(jnp.bfloat16), w2_ref[...],
                 preferred_element_type=jnp.float32)
    h2 = jnp.maximum(h2 + b2_ref[...], 0.0)

    # ---- Layer 3: (tb,256) @ (256, N_pad) bf16 -> f32 acc -------------------
    h3 = jnp.dot(h2.astype(jnp.bfloat16), w3_ref[...],
                 preferred_element_type=jnp.float32)
    # Drop the lane padding in-register before the epilogue so the EUP only
    # touches real output columns, then add bias.
    h3 = h3[:, :output_dim] + b3_ref[...]

    # Sigmoid via EUP: exp + approximate reciprocal (divide stays off the VPU).
    # Clamp so exp never overflows to +inf (sigmoid(-30) ~ 1e-13 ~ 0).
    e = jnp.exp(-jnp.maximum(h3, -30.0))
    o_ref[...] = pl.reciprocal(1.0 + e, approx=True).astype(o_ref.dtype)


def decoder_forward(z, condition, params, *, block_b=1024,
                    out_dtype=jnp.float32):
    """Pallas-backed Decoder forward. Returns (batch, output_dim) in out_dtype."""
    w1, b1, w2, b2, w3, b3 = params
    batch, latent_dim = z.shape
    cond_dim = condition.shape[1]
    output_dim = w3.shape[1]
    assert w1.shape[0] == latent_dim + cond_dim
    n_pad = _round_up(output_dim, LANE)

    # Batch tiling: derive the tile from the batch so padding waste is capped,
    # and force >= 2 grid steps when batch allows so v7x shards across both TCs.
    num_steps = max(_cdiv(batch, block_b), 2 if batch >= 2 * SUBLANE else 1)
    tb = _round_up(_cdiv(batch, num_steps), SUBLANE)
    b_pad = _round_up(batch, tb)
    grid = (b_pad // tb,)

    z = z.astype(jnp.float32)
    condition = condition.astype(jnp.float32)
    if b_pad != batch:
        pad = b_pad - batch
        z = jnp.pad(z, ((0, pad), (0, 0)))
        condition = jnp.pad(condition, ((0, pad), (0, 0)))

    # Weight prep (tiny; constant-folds under jit). W1 split once, W3 N-padded.
    w1a = w1[:latent_dim].astype(jnp.float32)                       # (Lz, 128)
    w1b = w1[latent_dim:].astype(jnp.float32)                       # (Lc, 128)
    b1p = b1.reshape(1, HID1).astype(jnp.float32)
    w2p = w2.astype(jnp.bfloat16)                                   # (128, 256)
    b2p = b2.reshape(1, HID2).astype(jnp.float32)
    w3p = jnp.pad(w3, ((0, 0), (0, n_pad - output_dim))).astype(jnp.bfloat16)
    b3p = b3.reshape(1, output_dim).astype(jnp.float32)

    def tile(shape):        # batch-tiled operand
        return pl.BlockSpec(shape, lambda i: (i, 0))

    def resident(shape):    # weights/biases resident across all grid steps
        return pl.BlockSpec(shape, lambda i: (0, 0))

    out_bytes = jnp.dtype(out_dtype).itemsize
    cost = pl.CostEstimate(
        flops=2 * b_pad * ((latent_dim + cond_dim) * HID1
                           + HID1 * HID2 + HID2 * n_pad),
        transcendentals=2 * b_pad * output_dim,        # exp + approx reciprocal
        bytes_accessed=(z.size * 4 + condition.size * 4
                        + (w1a.size + w1b.size) * 4
                        + (w2p.size + w3p.size) * 2
                        + (b1p.size + b2p.size + b3p.size) * 4
                        + b_pad * output_dim * out_bytes),
    )

    out = pl.pallas_call(
        functools.partial(_decoder_kernel, output_dim),
        out_shape=jax.ShapeDtypeStruct((b_pad, output_dim), out_dtype),
        grid=grid,
        in_specs=[
            tile((tb, latent_dim)),         # z  (full-width last dim)
            tile((tb, cond_dim)),           # condition
            resident((latent_dim, HID1)),   # W1a
            resident((cond_dim, HID1)),     # W1b
            resident((1, HID1)),            # b1
            resident((HID1, HID2)),         # W2
            resident((1, HID2)),            # b2
            resident((HID2, n_pad)),        # W3 (lane-padded N)
            resident((1, output_dim)),      # b3
        ],
        out_specs=tile((tb, output_dim)),
        compiler_params=pltpu.CompilerParams(
            dimension_semantics=("parallel",),
            vmem_limit_bytes=32 * 1024 * 1024),
        cost_estimate=cost,
    )(z, condition, w1a, w1b, b1p, w2p, b2p, w3p, b3p)

    if b_pad != batch:
        out = out[:batch]
    return out


def init_decoder_params(key, latent_dim, condition_dim, output_dim):
    """Deterministic init mimicking nn.Linear's uniform(-1/sqrt(fan_in), ...)."""
    d_in = latent_dim + condition_dim
    sizes = [(d_in, HID1), (HID1, HID2), (HID2, output_dim)]
    params = []
    for fan_in, fan_out in sizes:
        key, kw, kb = jax.random.split(key, 3)
        bound = 1.0 / (fan_in ** 0.5)
        w = jax.random.uniform(kw, (fan_in, fan_out), jnp.float32, -bound, bound)
        b = jax.random.uniform(kb, (1, fan_out), jnp.float32, -bound, bound)
        params += [w, b]
    return tuple(params)


def decoder_reference(z, condition, params):
    """Pure-JAX f32 reference (PyTorch semantics) for correctness checking."""
    w1, b1, w2, b2, w3, b3 = params
    x = jnp.concatenate([z, condition], axis=1)
    x = jax.nn.relu(x @ w1 + b1)
    x = jax.nn.relu(x @ w2 + b2)
    return jax.nn.sigmoid(x @ w3 + b3)


if __name__ == "__main__":
    latent_dim = 8
    condition_dim = 4
    output_dim = 64
    batch = 8

    key = jax.random.PRNGKey(0)
    kp, kz, kc = jax.random.split(key, 3)

    params = init_decoder_params(kp, latent_dim, condition_dim, output_dim)
    z = jax.random.normal(kz, (batch, latent_dim), jnp.float32)
    condition = jax.random.normal(kc, (batch, condition_dim), jnp.float32)

    out = decoder_forward(z, condition, params)
    out = jax.block_until_ready(out)

    ref = decoder_reference(z, condition, params)
    assert out.shape == (batch, output_dim), out.shape
    # bf16 matmuls (layers 2/3) + approx reciprocal vs f32 reference; sigmoid
    # output is in [0, 1], so 2e-2 absolute tolerance is a tight bound.
    # NOTE: downstream code needing tighter than ~1e-3 should not use the
    # approx/bf16 path.
    max_err = float(jnp.max(jnp.abs(out - ref)))
    assert max_err < 2e-2, f"mismatch vs reference, max abs err {max_err}"

    print("KERNEL_OK")
</pallas_src>

<mosaic_0001>
module attributes {stable_mosaic.version = 11 : i64} {
  func.func @_decoder_kernel(%arg0: i32, %arg1: memref<8x8xf32, #tpu.memory_space<vmem>>, %arg2: memref<8x4xf32, #tpu.memory_space<vmem>>, %arg3: memref<8x128xf32, #tpu.memory_space<vmem>>, %arg4: memref<4x128xf32, #tpu.memory_space<vmem>>, %arg5: memref<1x128xf32, #tpu.memory_space<vmem>>, %arg6: memref<128x256xbf16, #tpu.memory_space<vmem>>, %arg7: memref<1x256xf32, #tpu.memory_space<vmem>>, %arg8: memref<256x128xbf16, #tpu.memory_space<vmem>>, %arg9: memref<1x64xf32, #tpu.memory_space<vmem>>, %arg10: memref<8x64xf32, #tpu.memory_space<vmem>>) attributes {dimension_semantics = [#tpu.dimension_semantics<parallel>], iteration_bounds = array<i64: 1>, scalar_prefetch = 0 : i64, scratch_operands = 0 : i64, tpu.core_type = #tpu.core_type<tc>, window_params = [{transform_indices = @transform_0, window_bounds = array<i64: 8, 8>}, {transform_indices = @transform_1, window_bounds = array<i64: 8, 4>}, {pipeline_mode = #tpu.pipeline_mode<synchronous>, transform_indices = @transform_2, window_bounds = array<i64: 8, 128>}, {pipeline_mode = #tpu.pipeline_mode<synchronous>, transform_indices = @transform_3, window_bounds = array<i64: 4, 128>}, {pipeline_mode = #tpu.pipeline_mode<synchronous>, transform_indices = @transform_4, window_bounds = array<i64: 1, 128>}, {pipeline_mode = #tpu.pipeline_mode<synchronous>, transform_indices = @transform_5, window_bounds = array<i64: 128, 256>}, {pipeline_mode = #tpu.pipeline_mode<synchronous>, transform_indices = @transform_6, window_bounds = array<i64: 1, 256>}, {pipeline_mode = #tpu.pipeline_mode<synchronous>, transform_indices = @transform_7, window_bounds = array<i64: 256, 128>}, {pipeline_mode = #tpu.pipeline_mode<synchronous>, transform_indices = @transform_8, window_bounds = array<i64: 1, 64>}, {transform_indices = @transform_9, window_bounds = array<i64: 8, 64>}]} {
    %c0 = arith.constant 0 : index
    %c0_0 = arith.constant 0 : index
    %0 = vector.load %arg1[%c0, %c0_0] : memref<8x8xf32, #tpu.memory_space<vmem>>, vector<8x8xf32>
    %c0_1 = arith.constant 0 : index
    %c0_2 = arith.constant 0 : index
    %1 = vector.load %arg3[%c0_1, %c0_2] : memref<8x128xf32, #tpu.memory_space<vmem>>, vector<8x128xf32>
    %cst = arith.constant dense<0.000000e+00> : vector<8x128xf32>
    %2 = tpu.matmul %0, %1, %cst {dimension_numbers = #tpu.dot_dimension_numbers<[1], [0], [0], [1], [0, 0, 1, 1], [], []>} : vector<8x8xf32>, vector<8x128xf32>, vector<8x128xf32> -> vector<8x128xf32>
    %c0_3 = arith.constant 0 : index
    %c0_4 = arith.constant 0 : index
    %3 = vector.load %arg2[%c0_3, %c0_4] : memref<8x4xf32, #tpu.memory_space<vmem>>, vector<8x4xf32>
    %c0_5 = arith.constant 0 : index
    %c0_6 = arith.constant 0 : index
    %4 = vector.load %arg4[%c0_5, %c0_6] : memref<4x128xf32, #tpu.memory_space<vmem>>, vector<4x128xf32>
    %cst_7 = arith.constant dense<0.000000e+00> : vector<8x128xf32>
    %5 = tpu.matmul %3, %4, %cst_7 {dimension_numbers = #tpu.dot_dimension_numbers<[1], [0], [0], [1], [0, 0, 1, 1], [], []>} : vector<8x4xf32>, vector<4x128xf32>, vector<8x128xf32> -> vector<8x128xf32>
    %6 = arith.addf %2, %5 : vector<8x128xf32>
    %c0_8 = arith.constant 0 : index
    %c0_9 = arith.constant 0 : index
    %7 = vector.load %arg5[%c0_8, %c0_9] : memref<1x128xf32, #tpu.memory_space<vmem>>, vector<1x128xf32>
    %8 = vector.broadcast %7 : vector<1x128xf32> to vector<8x128xf32>
    %9 = arith.addf %6, %8 : vector<8x128xf32>
    %cst_10 = arith.constant 0.000000e+00 : f32
    %10 = vector.broadcast %cst_10 : f32 to vector<8x128xf32>
    %11 = arith.maximumf %9, %10 : vector<8x128xf32>
    %12 = arith.truncf %11 : vector<8x128xf32> to vector<8x128xbf16>
    %c0_11 = arith.constant 0 : index
    %c0_12 = arith.constant 0 : index
    %13 = vector.load %arg6[%c0_11, %c0_12] : memref<128x256xbf16, #tpu.memory_space<vmem>>, vector<128x256xbf16>
    %cst_13 = arith.constant dense<0.000000e+00> : vector<8x256xf32>
    %14 = tpu.matmul %12, %13, %cst_13 {dimension_numbers = #tpu.dot_dimension_numbers<[1], [0], [0], [1], [0, 0, 1, 1], [], []>} : vector<8x128xbf16>, vector<128x256xbf16>, vector<8x256xf32> -> vector<8x256xf32>
    %c0_14 = arith.constant 0 : index
    %c0_15 = arith.constant 0 : index
    %15 = vector.load %arg7[%c0_14, %c0_15] : memref<1x256xf32, #tpu.memory_space<vmem>>, vector<1x256xf32>
    %16 = vector.broadcast %15 : vector<1x256xf32> to vector<8x256xf32>
    %17 = arith.addf %14, %16 : vector<8x256xf32>
    %cst_16 = arith.constant 0.000000e+00 : f32
    %18 = vector.broadcast %cst_16 : f32 to vector<8x256xf32>
    %19 = arith.maximumf %17, %18 : vector<8x256xf32>
    %20 = arith.truncf %19 : vector<8x256xf32> to vector<8x256xbf16>
    %c0_17 = arith.constant 0 : index
    %c0_18 = arith.constant 0 : index
    %21 = vector.load %arg8[%c0_17, %c0_18] : memref<256x128xbf16, #tpu.memory_space<vmem>>, vector<256x128xbf16>
    %cst_19 = arith.constant dense<0.000000e+00> : vector<8x128xf32>
    %22 = tpu.matmul %20, %21, %cst_19 {dimension_numbers = #tpu.dot_dimension_numbers<[1], [0], [0], [1], [0, 0, 1, 1], [], []>} : vector<8x256xbf16>, vector<256x128xbf16>, vector<8x128xf32> -> vector<8x128xf32>
    %23 = vector.extract_strided_slice %22 {offsets = [0, 0], sizes = [8, 64], strides = [1, 1]} : vector<8x128xf32> to vector<8x64xf32>
    %c0_20 = arith.constant 0 : index
    %c0_21 = arith.constant 0 : index
    %24 = vector.load %arg9[%c0_20, %c0_21] : memref<1x64xf32, #tpu.memory_space<vmem>>, vector<1x64xf32>
    %25 = vector.broadcast %24 : vector<1x64xf32> to vector<8x64xf32>
    %26 = arith.addf %23, %25 : vector<8x64xf32>
    %cst_22 = arith.constant -3.000000e+01 : f32
    %27 = vector.broadcast %cst_22 : f32 to vector<8x64xf32>
    %28 = arith.maximumf %26, %27 : vector<8x64xf32>
    %cst_23 = arith.constant 0.000000e+00 : f32
    %29 = vector.broadcast %cst_23 : f32 to vector<8x64xf32>
    %30 = arith.subf %29, %28 : vector<8x64xf32>
    %31 = math.exp %30 : vector<8x64xf32>
    %cst_24 = arith.constant 1.000000e+00 : f32
    %32 = vector.broadcast %cst_24 : f32 to vector<8x64xf32>
    %33 = arith.addf %32, %31 : vector<8x64xf32>
    %34 = tpu.reciprocal %33 {approx = true} : vector<8x64xf32> -> vector<8x64xf32>
    %c0_25 = arith.constant 0 : index
    %c0_26 = arith.constant 0 : index
    %35 = vector.load %arg10[%c0_25, %c0_26] : memref<8x64xf32, #tpu.memory_space<vmem>>, vector<8x64xf32>
    tpu.vector_store %arg10[%c0_25, %c0_26], %34 {strides = array<i32>} : memref<8x64xf32, #tpu.memory_space<vmem>>, vector<8x64xf32>,
    return
  }
  func.func @transform_0(%arg0: i32) -> (i32, i32) {
    %c0_i32 = arith.constant 0 : i32
    %c0_i32_0 = arith.constant 0 : i32
    return %arg0, %c0_i32 : i32, i32
  }
  func.func @transform_1(%arg0: i32) -> (i32, i32) {
    %c0_i32 = arith.constant 0 : i32
    %c0_i32_0 = arith.constant 0 : i32
    return %arg0, %c0_i32 : i32, i32
  }
  func.func @transform_2(%arg0: i32) -> (i32, i32) {
    %c0_i32 = arith.constant 0 : i32
    %c0_i32_0 = arith.constant 0 : i32
    %c0_i32_1 = arith.constant 0 : i32
    return %c0_i32, %c0_i32_0 : i32, i32
  }
  func.func @transform_3(%arg0: i32) -> (i32, i32) {
    %c0_i32 = arith.constant 0 : i32
    %c0_i32_0 = arith.constant 0 : i32
    %c0_i32_1 = arith.constant 0 : i32
    return %c0_i32, %c0_i32_0 : i32, i32
  }
  func.func @transform_4(%arg0: i32) -> (i32, i32) {
    %c0_i32 = arith.constant 0 : i32
    %c0_i32_0 = arith.constant 0 : i32
    %c0_i32_1 = arith.constant 0 : i32
    return %c0_i32, %c0_i32_0 : i32, i32
  }
  func.func @transform_5(%arg0: i32) -> (i32, i32) {
    %c0_i32 = arith.constant 0 : i32
    %c0_i32_0 = arith.constant 0 : i32
    %c0_i32_1 = arith.constant 0 : i32
    return %c0_i32, %c0_i32_0 : i32, i32
  }
  func.func @transform_6(%arg0: i32) -> (i32, i32) {
    %c0_i32 = arith.constant 0 : i32
    %c0_i32_0 = arith.constant 0 : i32
    %c0_i32_1 = arith.constant 0 : i32
    return %c0_i32, %c0_i32_0 : i32, i32
  }
  func.func @transform_7(%arg0: i32) -> (i32, i32) {
    %c0_i32 = arith.constant 0 : i32
    %c0_i32_0 = arith.constant 0 : i32
    %c0_i32_1 = arith.constant 0 : i32
    return %c0_i32, %c0_i32_0 : i32, i32
  }
  func.func @transform_8(%arg0: i32) -> (i32, i32) {
    %c0_i32 = arith.constant 0 : i32
    %c0_i32_0 = arith.constant 0 : i32
    %c0_i32_1 = arith.constant 0 : i32
    return %c0_i32, %c0_i32_0 : i32, i32
  }
  func.func @transform_9(%arg0: i32) -> (i32, i32) {
    %c0_i32 = arith.constant 0 : i32
    %c0_i32_0 = arith.constant 0 : i32
    return %arg0, %c0_i32 : i32, i32
  }
}

</mosaic_0001>

<bundles_post_ra>
// kernel: tpu_custom_call.1
= control target key start
LH: loop header
LB: loop body
LE: loop exit
PB: predicated region body
PF: predicated region fallthrough
CT: control target
= control target key end

     0   :  { %14 = vsyncpa [#allocation3], 0  ;;  %s825_s0 = inlined_call_operand.vmem [shape: f32[8,8], index: 0, kind: input, shape index: {}]   ;;  %s826_s1 = inlined_call_operand.vmem [shape: f32[8,4], index: 1, kind: input, shape index: {}]   ;;  %s827_s2 = inlined_call_operand.hbm [shape: f32[8,128], index: 2, kind: input, shape index: {}]   ;;  %s828_s3 = inlined_call_operand.vmem [shape: f32[4,128], index: 3, kind: input, shape index: {}]   ;;  %s829_s4 = inlined_call_operand.vmem [shape: f32[1,128], index: 4, kind: input, shape index: {}]   ;;  %s830_s5 = inlined_call_operand.hbm [shape: bf16[128,256], index: 5, kind: input, shape index: {}]   ;;  %s831_s6 = inlined_call_operand.vmem [shape: f32[1,256], index: 6, kind: input, shape index: {}]   ;;  %s832_s7 = inlined_call_operand.hbm [shape: bf16[256,128], index: 7, kind: input, shape index: {}]   ;;  %s833_s8 = inlined_call_operand.vmem [shape: f32[1,64], index: 8, kind: input, shape index: {}]   ;;  %s834_s9 = inlined_call_operand.hbm [shape: f32[8,64], index: 9, kind: output, shape index: {}]  }
   0x1   :  { %15 = vsyncpa [#allocation6], 0  ;;  %s40_s11 = sshll.u32 %s830_s5, 4  ;;  %s41_s11 = int_to_ptr.hbm [resolvable:$true] %s40_s11 }
   0x2   :  { %16 = vsyncpa [#allocation4], 0  ;;  %s737_s12 = smov [#allocation5]   ;;  %s26_s16 = sshll.u32 %s827_s2, 4  ;;  %s27_s16 = int_to_ptr.hbm [resolvable:$true] %s26_s16 }
   0x3   :  { %s42_s13 = sshll.u32 %s737_s12, 4  ;;  %s738_s17 = smov 128   ;;  %s43_s13 = int_to_ptr.vmem [resolvable:$true] %s42_s13 }
   0x4   :  { %s739_s18 = smov 8   ;;  %s740_s19 = smov [#allocation2]  }
   0x5   :  { %48 = dma.hbm_to_vmem [thread:$0]  %s41_s11, 2048, %s43_s13, [#allocation6], %s738_s17, %s738_s17, %s739_s18  }
   0x6   :  { %s28_s20 = sshll.u32 %s740_s19, 4  ;;  %s55_s23 = sshll.u32 %s832_s7, 4  ;;  %s29_s20 = int_to_ptr.vmem [resolvable:$true] %s28_s20  ;;  %s56_s23 = int_to_ptr.hbm [resolvable:$true] %s55_s23 }
   0x7   :  { %31 = dma.hbm_to_vmem [thread:$0]  %s27_s16, 128, %s29_s20, [#allocation3]  }
   0x8   :  { %s741_s5 = smov [#allocation7]   ;;  %s742_s25 = smov 64  }
   0x9   :  { %s57_s24 = sshll.u32 %s741_s5, 4  ;;  %s743_s26 = smov 4   ;;  %s58_s24 = int_to_ptr.vmem [resolvable:$true] %s57_s24 }
   0xa   :  { %63 = dma.hbm_to_vmem [thread:$0]  %s56_s23, 2048, %s58_s24, [#allocation6], %s742_s25, %s742_s25, %s743_s26  }
   0xb   :  { %731 = dma.done.wait [#allocation3], 128  }
   0xc   :  { %732 = vsyncadd [#allocation3], 4294967168 }
   0xd   :  { %733 = dma.done.wait [#allocation6], 4096  }
   0xe   :  { %734 = vsyncadd [#allocation6], 4294963200  ;;  %vm86_vm0 = vcmask 1043456   ;;  %vm82_vm1 = vcmask 31744   ;;  %vm110_vm2 = vcmask 64512   ;;  %v79_v1 = vld [vmem:[#allocation2] sm:$0xff] }
   0xf   :  { %v81_v0 = vld [vmem:[%s828_s3] sm:$0xf]  ;;  %129 = vmatpush.msra.mxu1 %v79_v1  ;;  %v519_v4 = vld [vmem:[#allocation5 + $0x70] sm:$0xf]  ;;  %v603_v7 = vld [vmem:[#allocation5 + $0x74] sm:$0xf] }
  0x10   :  { %v80_v2 = vld [vmem:[%s826_s1] sm:$0xff]  ;;  %458 = vmatpush.msk.msra.mxu0 %vm86_vm0, %v81_v0  ;;  %v511_v9 = vld [vmem:[#allocation5 + $0x60] sm:$0xf]  ;;  %v602_v11 = vld [vmem:[#allocation5 + $0x64] sm:$0xf0]  ;;  %s447_s15 = sshll.u32 %s834_s9, 4  ;;  %s448_s15 = int_to_ptr.hbm [resolvable:$true] %s447_s15 }
  0x11   :  { %v78_v3 = vld [vmem:[%s825_s0] sm:$0xff]  ;;  %459 = vmatmul.msk.f32.vlgmr.msra.gmra.mxu0 %vm82_vm1, %v80_v2  ;;  %v601_v12 = vld [vmem:[#allocation5 + $0x64] sm:$0xf]  ;;  %v513_v13 = vld [vmem:[#allocation5 + $0x68] sm:$0xf0]  ;;  %v512_v14 = vor.u32 %v602_v11, %v511_v9  ;;  %vm438_vm3 = vcmask 523264  }
  0x12   :  { %v604_v5 = vld [vmem:[#allocation5 + $0x74] sm:$0xf0]  ;;  %460 = vmatmul.msk.f32.vlgmr.msra.gmra.mxu1 %vm110_vm2, %v78_v3  ;;  %v521_v8 = vld [vmem:[#allocation5 + $0x78] sm:$0xf0]  ;;  %v516_v15 = vor.u32 %v601_v12, %v513_v13  ;;  %v503_v16 = vld [vmem:[#allocation5 + $0x50] sm:$0xf] }
  0x13   :  { %v520_v6 = vor.u32 %v604_v5, %v519_v4  ;;  %v524_v10 = vor.u32 %v603_v7, %v521_v8  ;;  %v600_v17 = vld [vmem:[#allocation5 + $0x54] sm:$0xf0]  ;;  %v599_v18 = vld [vmem:[#allocation5 + $0x54] sm:$0xf]  ;;  %v505_v19 = vld [vmem:[#allocation5 + $0x58] sm:$0xf0] }
  0x14   :  { %v504_v20 = vor.u32 %v600_v17, %v503_v16  ;;  %v495_v21 = vld [vmem:[#allocation5 + $0x40] sm:$0xf]  ;;  %v508_v22 = vor.u32 %v599_v18, %v505_v19  ;;  %v598_v23 = vld [vmem:[#allocation5 + $0x44] sm:$0xf0]  ;;  %v597_v24 = vld [vmem:[#allocation5 + $0x44] sm:$0xf] }
  0x15   :  { %243 = vmatpush.bf16.msra.mxu2 %v520_v6  ;;  %256 = vmatpush.bf16.msra.mxu3 %v524_v10  ;;  %v497_v25 = vld [vmem:[#allocation5 + $0x48] sm:$0xf0]  ;;  %v496_v26 = vor.u32 %v598_v23, %v495_v21  ;;  %v487_v28 = vld [vmem:[#allocation5 + $0x30] sm:$0xf]  ;;  %v596_v29 = vld [vmem:[#allocation5 + $0x34] sm:$0xf0] }
  0x16   :  { %v500_v27 = vor.u32 %v597_v24, %v497_v25  ;;  %v595_v30 = vld [vmem:[#allocation5 + $0x34] sm:$0xf]  ;;  %v489_v31 = vld [vmem:[#allocation5 + $0x38] sm:$0xf0]  ;;  %v488_v32 = vor.u32 %v596_v29, %v487_v28  ;;  %v479_v34 = vld [vmem:[#allocation5 + $0x20] sm:$0xf] }
  0x17   :  { %v492_v33 = vor.u32 %v595_v30, %v489_v31  ;;  %v594_v35 = vld [vmem:[#allocation5 + $0x24] sm:$0xf0]  ;;  %v593_v36 = vld [vmem:[#allocation5 + $0x24] sm:$0xf]  ;;  %v481_v37 = vld [vmem:[#allocation5 + $0x28] sm:$0xf0] }
  0x18   :  { %v480_v38 = vor.u32 %v594_v35, %v479_v34  ;;  %v484_v39 = vor.u32 %v593_v36, %v481_v37  ;;  %v471_v40 = vld [vmem:[#allocation5 + $0x10] sm:$0xf]  ;;  %v592_v41 = vld [vmem:[#allocation5 + $0x14] sm:$0xf0]  ;;  %v591_v42 = vld [vmem:[#allocation5 + $0x14] sm:$0xf] }
  0x19   :  { %244 = vmatpush.bf16.msra.mxu2 %v512_v14  ;;  %257 = vmatpush.bf16.msra.mxu3 %v516_v15  ;;  %v472_v43 = vor.u32 %v592_v41, %v471_v40  ;;  %v473_v44 = vld [vmem:[#allocation5 + $0x18] sm:$0xf0]  ;;  %v463_v46 = vld [vmem:[#allocation5] sm:$0xf]  ;;  %v590_v47 = vld [vmem:[#allocation5 + $0x4] sm:$0xf0] }
  0x1a   :  { %v476_v45 = vor.u32 %v591_v42, %v473_v44  ;;  %v589_v48 = vld [vmem:[#allocation5 + $0x4] sm:$0xf]  ;;  %v464_v49 = vor.u32 %v590_v47, %v463_v46  ;;  %v465_v50 = vld [vmem:[#allocation5 + $0x8] sm:$0xf0]  ;;  %v612_v52 = vld [vmem:[#allocation7 + $0x38] sm:$0xff] }
  0x1b   :  { %v468_v51 = vor.u32 %v589_v48, %v465_v50  ;;  %v620_v53 = vld [vmem:[#allocation7 + $0x78] sm:$0xff]  ;;  %401 = vmatpush.bf16.msrb.mxu0 %v612_v52  ;;  %v611_v54 = vld [vmem:[#allocation7 + $0x30] sm:$0xff]  ;;  %v610_v56 = vld [vmem:[#allocation7 + $0x28] sm:$0xff] }
  0x1c   :  { %414 = vmatpush.bf16.msrb.mxu1 %v620_v53  ;;  %v619_v55 = vld [vmem:[#allocation7 + $0x70] sm:$0xff]  ;;  %v618_v57 = vld [vmem:[#allocation7 + $0x68] sm:$0xff]  ;;  %v609_v58 = vld [vmem:[#allocation7 + $0x20] sm:$0xff] }
  0x1d   :  { %245 = vmatpush.bf16.msra.mxu2 %v504_v20  ;;  %258 = vmatpush.bf16.msra.mxu3 %v508_v22  ;;  %v617_v59 = vld [vmem:[#allocation7 + $0x60] sm:$0xff]  ;;  %v608_v60 = vld [vmem:[#allocation7 + $0x18] sm:$0xff]  ;;  %v607_v62 = vld [vmem:[#allocation7 + $0x10] sm:$0xff] }
  0x1e   :  { %v616_v61 = vld [vmem:[#allocation7 + $0x58] sm:$0xff]  ;;  %v615_v63 = vld [vmem:[#allocation7 + $0x50] sm:$0xff]  ;;  %v606_v7 = vld [vmem:[#allocation7 + $0x8] sm:$0xff] }
  0x1f   :  { %402 = vmatpush.bf16.msrb.mxu0 %v611_v54  ;;  %v629_v0 = vld [vmem:[%s829_s4] ss:$0 sm:$0xff]  ;;  %v614_v8 = vld [vmem:[#allocation7 + $0x48] sm:$0xff]  ;;  %v605_v9 = vld [vmem:[#allocation7] sm:$0xff] }
  0x20   :  { %415 = vmatpush.bf16.msrb.mxu1 %v619_v55  ;;  %v613_v10 = vld [vmem:[#allocation7 + $0x40] sm:$0xff]  ;;  %v157_v11 = vld [vmem:[%s831_s6] sm:$0x3]  ;;  %s744_s6 = smov [#allocation8]  }
  0x21   :  { %246 = vmatpush.bf16.msra.mxu2 %v496_v26  ;;  %259 = vmatpush.bf16.msra.mxu3 %v500_v27  ;;  %v159_v12 = vperm.slane %v157_v11, 0  ;;  %v160_v13 = vperm.slane %v157_v11, 1  ;;  %v630_v24 = vld [vmem:[%s833_s8] ss:$0 sm:$0xff]  ;;  %s445_s12 = sshll.u32 %s744_s6, 4  ;;  %s446_s12 = int_to_ptr.vmem [resolvable:$true] %s445_s12 }
  0x23   :  { %403 = vmatpush.bf16.msrb.mxu0 %v610_v56 }
  0x24   :  { %416 = vmatpush.bf16.msrb.mxu1 %v618_v57 }
  0x25   :  { %247 = vmatpush.bf16.msra.mxu2 %v488_v32  ;;  %260 = vmatpush.bf16.msra.mxu3 %v492_v33 }
  0x27   :  { %404 = vmatpush.bf16.msrb.mxu0 %v609_v58 }
  0x28   :  { %417 = vmatpush.bf16.msrb.mxu1 %v617_v59 }
  0x29   :  { %248 = vmatpush.bf16.msra.mxu2 %v480_v38  ;;  %261 = vmatpush.bf16.msra.mxu3 %v484_v39 }
  0x2b   :  { %405 = vmatpush.bf16.msrb.mxu0 %v608_v60 }
  0x2c   :  { %418 = vmatpush.bf16.msrb.mxu1 %v616_v61 }
  0x2d   :  { %249 = vmatpush.bf16.msra.mxu2 %v472_v43  ;;  %262 = vmatpush.bf16.msra.mxu3 %v476_v45 }
  0x2f   :  { %406 = vmatpush.bf16.msrb.mxu0 %v607_v62 }
  0x30   :  { %419 = vmatpush.bf16.msrb.mxu1 %v615_v63 }
  0x31   :  { %250 = vmatpush.bf16.msra.mxu2 %v464_v49  ;;  %263 = vmatpush.bf16.msra.mxu3 %v468_v51 }
  0x33   :  { %407 = vmatpush.bf16.msrb.mxu0 %v606_v7 }
  0x34   :  { %420 = vmatpush.bf16.msrb.mxu1 %v614_v8 }
  0x37   :  { %408 = vmatpush.bf16.msrb.mxu0 %v605_v9 }
  0x38   :  { %421 = vmatpush.bf16.msrb.mxu1 %v613_v10 }
  0x8e   :  { %v107_v1 = vpop.f32.mrf.mxu0 }
  0x8f   :  { %v131_v2 = vpop.f32.mrf.mxu1 }
  0x90   :  { %v132_v3 = vadd.f32 %v131_v2, %v107_v1 }
  0x92   :  { %v138_v4 = vadd.f32 %v629_v0, %v132_v3 }
  0x94   :  { %v139_v5 = vmax.f32 %v138_v4, 0.0 }
  0x96   :  { %v140_v6 = vpack.c.bf16 %v139_v5, %v139_v5 }
  0x98   :  { %251 = vmatmul.bf16.vlgmr.msra.gmra.mxu2 %v140_v6  ;;  %264 = vmatmul.bf16.vlgmr.msra.gmra.mxu3 %v140_v6 }
 0x11b   :  { %v252_v14 = vpop.f32.mrf.mxu2  ;;  %v265_v15 = vpop.f32.mrf.mxu3 }
 0x11c   :  { %v253_v16 = vadd.f32 %v252_v14, %v159_v12  ;;  %v266_v17 = vadd.f32 %v265_v15, %v160_v13 }
 0x11e   :  { %v269_v18 = vmax.f32 %v253_v16, 0.0  ;;  %v270_v19 = vmax.f32 %v266_v17, 0.0 }
 0x120   :  { %v271_v20 = vpack.c.bf16 %v269_v18, %v269_v18  ;;  %v272_v21 = vpack.c.bf16 %v270_v19, %v270_v19 }
 0x122   :  { %409 = vmatmul.bf16.vlgmr.msrb.gmra.mxu0 %v271_v20  ;;  %422 = vmatmul.bf16.vlgmr.msrb.gmra.mxu1 %v272_v21 }
 0x123   :  { %v254_v22 = vpop.f32.mrf.mxu2  ;;  %v267_v23 = vpop.f32.mrf.mxu3 }
 0x19f   :  { %v410_v25 = vpop.f32.mrf.mxu0  ;;  %v423_v26 = vpop.f32.mrf.mxu1 }
 0x1a0   :  { %v424_v27 = vadd.f32 %v423_v26, %v410_v25 }
 0x1a2   :  { %v431_v28 = vadd.f32 %v630_v24, %v424_v27 }
 0x1a4   :  { %v432_v29 = vmax.f32 %v431_v28, -30.0 }
 0x1a6   :  { %v433_v30 = vsub.f32 0.0, %v432_v29 }
 0x1a7   :  { %v412_v31 = vpop.f32.mrf.mxu0  ;;  %v425_v32 = vpop.f32.mrf.mxu1 }
 0x1a8   :  { %v434_v33 = vmul.f32 1.442695, %v433_v30 }
 0x1aa   :  { %631 = vpow2.f32 %v434_v33 }
 0x1b0   :  { %v632_v34 = vpop.eup %631 }
 0x1b1   :  { %v436_v35 = vadd.f32 1.0, %v632_v34 }
 0x1b3   :  { %633 = vrcp.f32 %v436_v35 }
 0x1b9   :  { %v634_v36 = vpop.eup %633 }
 0x1ba   :  { %439 = vst.msk [vmem:[#allocation8] sm:$0xff] %vm438_vm3, %v634_v36 }
 0x1bb   :  { %450 = dma.vmem_to_hbm [thread:$0]  %s446_s12, 128, %s448_s15, [#allocation4]  }
 0x1bc   :  { %735 = dma.done.wait [#allocation4], 128  }
 0x1bd   :  { %736 = vsyncadd [#allocation4], 4294967168 }
 0x1be   :  { %455 = vsyncpa [#allocation3], 1 }
 0x1bf   :  { %456 = vsyncpa [#allocation6], 1 }
 0x1c0   :  { %457 = vsyncpa [#allocation4], 1 }

</bundles_post_ra>
